<compile_context>
chip_gen: v6e
topology: v6e:2x2x1
jax: 0.10.0
libtpu: 0.0.40
codegen_flags: <defaults>
</compile_context>

<pallas_src>
import functools
import math

import jax
import jax.numpy as jnp
from jax.experimental import pallas as pl
from jax.experimental.pallas import tpu as pltpu

EPS = 1e-5


# --------------------------------------------------------------------------- #
# Helpers
# --------------------------------------------------------------------------- #
def _const_spec(shape):
    """BlockSpec for an operand whose block index is constant across the grid.

    Single-buffered: the block never changes, so default 2-deep pipelining would
    only double its VMEM footprint."""
    idx = lambda i: (0,) * len(shape)
    try:
        return pl.BlockSpec(shape, idx, pipeline_mode=pl.Buffered(1))
    except TypeError:  # older BlockSpec signature without pipeline_mode
        return pl.BlockSpec(shape, idx)


def _vmem_limit_bytes():
    """Per-generation VMEM request, leaving headroom for compiler scratch."""
    cap = 64 * 1024 * 1024
    try:
        info = pltpu.get_tpu_info()
        cap = int(getattr(info, "vmem_capacity_bytes", cap))
    except Exception:
        pass
    return int(min(max(cap - 16 * 1024 * 1024, 32 * 1024 * 1024),
                   100 * 1024 * 1024))


def _pick_block(s, big_vmem):
    """Largest seq block dividing s (preferring 256 on 128-MiB-VMEM chips),
    then shrunk if needed so the grid has >= 2 steps (v7x dual-TC)."""
    preferred = 256 if big_vmem else 128
    tq = s
    for b in (preferred, 256, 128, 64, 32, 16, 8):
        if b <= s and s % b == 0:
            tq = b
            break
    if s // tq < 2:
        for b in (256, 128, 64, 32, 16, 8):
            if b < tq and s % b == 0:
                tq = b
                break
    return tq


# --------------------------------------------------------------------------- #
# Kernel 1: fused K|V projection (tiled over the sequence).
# --------------------------------------------------------------------------- #
def kv_proj_kernel(x_ref, wkv_ref, bkv_ref, k_ref, v_ref, *, d_int):
    x = x_ref[...].astype(jnp.bfloat16)                                   # [tq, D]
    kv = jnp.dot(x, wkv_ref[...], preferred_element_type=jnp.float32)     # [tq, 2*d_int]
    kv = kv + bkv_ref[...]
    k_ref[...] = kv[:, :d_int].astype(k_ref.dtype)
    v_ref[...] = kv[:, d_int:].astype(v_ref.dtype)


# --------------------------------------------------------------------------- #
# Kernel 2: Q proj + attention + residual/LN1 + FFN + residual/LN2 (per q block).
# --------------------------------------------------------------------------- #
def attn_ffn_kernel(
    x_ref,                       # [tq, D]    f32  (residual input)
    wq_ref, bq_ref,              # [D, d_int] bf16 (scale folded), [1, d_int] f32
    k_ref, v_ref,                # [S, d_int] bf16 (VMEM-resident)
    wo_ref, bo_ref,              # [d_int, D] bf16, [1, D] f32
    g1_ref, be1_ref,             # [1, D] f32
    w1_ref, b1_ref,              # [D, d_int] bf16, [1, d_int] f32
    w2_ref, b2_ref,              # [d_int, D] bf16, [1, D] f32
    g2_ref, be2_ref,             # [1, D] f32
    out_ref,                     # [tq, D]
    attn_ref,                    # [tq, S]
):
    x = x_ref[...]
    x_bf = x.astype(jnp.bfloat16)

    # ---- Q projection (1/sqrt(d_int) already folded into wq/bq) --------------
    q = jnp.dot(x_bf, wq_ref[...], preferred_element_type=jnp.float32) + bq_ref[...]

    # ---- scores: q . k^T without an explicit transpose (contract last axes) --
    scores = jax.lax.dot_general(
        q.astype(jnp.bfloat16), k_ref[...],
        dimension_numbers=(((1,), (1,)), ((), ())),
        preferred_element_type=jnp.float32,
    )                                                                      # [tq, S]

    # ---- numerically stable softmax; exact reciprocal (weights are returned) -
    scores = scores - jnp.max(scores, axis=-1, keepdims=True)
    p = jnp.exp(scores)
    inv_l = pl.reciprocal(jnp.sum(p, axis=-1, keepdims=True))
    attn = p * inv_l                                                       # [tq, S]
    attn_ref[...] = attn.astype(attn_ref.dtype)

    # ---- attention output + output projection ---------------------------------
    attn_out = jnp.dot(attn.astype(jnp.bfloat16), v_ref[...],
                       preferred_element_type=jnp.float32)                 # [tq, d_int]
    proj = jnp.dot(attn_out.astype(jnp.bfloat16), wo_ref[...],
                   preferred_element_type=jnp.float32) + bo_ref[...]       # [tq, D]

    # ---- residual + LayerNorm 1 (biased variance, eps=1e-5, like torch) -------
    h = x.astype(jnp.float32) + proj
    mu = jnp.mean(h, axis=-1, keepdims=True)
    c = h - mu
    var = jnp.mean(c * c, axis=-1, keepdims=True)
    h = c * jax.lax.rsqrt(var + EPS) * g1_ref[...] + be1_ref[...]

    # ---- FFN: Linear -> ReLU -> Linear (bf16 MXU inputs, f32 accumulate) ------
    f = jnp.dot(h.astype(jnp.bfloat16), w1_ref[...],
                preferred_element_type=jnp.float32) + b1_ref[...]
    f = jnp.maximum(f, 0.0)
    f = jnp.dot(f.astype(jnp.bfloat16), w2_ref[...],
                preferred_element_type=jnp.float32) + b2_ref[...]

    # ---- residual + LayerNorm 2 ------------------------------------------------
    h2 = h + f
    mu2 = jnp.mean(h2, axis=-1, keepdims=True)
    c2 = h2 - mu2
    var2 = jnp.mean(c2 * c2, axis=-1, keepdims=True)
    out = c2 * jax.lax.rsqrt(var2 + EPS) * g2_ref[...] + be2_ref[...]
    out_ref[...] = out.astype(out_ref.dtype)


# --------------------------------------------------------------------------- #
# Weight packing (done ONCE, outside the per-call path)
# --------------------------------------------------------------------------- #
def pack_params(params):
    d_int = params["wq"].shape[1]
    scale = jnp.float32(1.0 / math.sqrt(d_int))
    return dict(
        wq=(params["wq"] * scale).astype(jnp.bfloat16),
        bq=(params["bq"] * scale).astype(jnp.float32),
        wkv=jnp.concatenate([params["wk"], params["wv"]], axis=1).astype(jnp.bfloat16),
        bkv=jnp.concatenate([params["bk"], params["bv"]], axis=1).astype(jnp.float32),
        wo=params["wo"].astype(jnp.bfloat16), bo=params["bo"],
        w1=params["w1"].astype(jnp.bfloat16), b1=params["b1"],
        w2=params["w2"].astype(jnp.bfloat16), b2=params["b2"],
        g1=params["g1"], be1=params["be1"],
        g2=params["g2"], be2=params["be2"],
    )


# --------------------------------------------------------------------------- #
# Wrapper
# --------------------------------------------------------------------------- #
def transformer_layer(x, pp):
    """x: [seq, d_model] float32. pp: packed params from pack_params()."""
    S, D = x.shape
    d_int = pp["wq"].shape[1]
    vmem_limit = _vmem_limit_bytes()
    tq = _pick_block(S, big_vmem=vmem_limit > 64 * 1024 * 1024)
    assert S % tq == 0, f"sequence length {S} not divisible by q block {tq}"
    grid = (S // tq,)

    cparams = pltpu.CompilerParams(
        dimension_semantics=("parallel",),       # shards q-blocks across v7x TCs
        vmem_limit_bytes=vmem_limit,
    )

    # ---- Stage 1: fused K|V projection -----------------------------------------
    flops1 = 2 * S * D * 2 * d_int
    bytes1 = S * D * 4 + D * 2 * d_int * 2 + 2 * d_int * 4 + 2 * S * d_int * 2
    k, v = pl.pallas_call(
        functools.partial(kv_proj_kernel, d_int=d_int),
        grid=grid,
        in_specs=[
            pl.BlockSpec((tq, D), lambda i: (i, 0)),
            _const_spec((D, 2 * d_int)),
            _const_spec((1, 2 * d_int)),
        ],
        out_specs=[
            pl.BlockSpec((tq, d_int), lambda i: (i, 0)),
            pl.BlockSpec((tq, d_int), lambda i: (i, 0)),
        ],
        out_shape=[jax.ShapeDtypeStruct((S, d_int), jnp.bfloat16)] * 2,
        compiler_params=cparams,
        cost_estimate=pl.CostEstimate(
            flops=flops1, transcendentals=0, bytes_accessed=bytes1),
    )(x, pp["wkv"], pp["bkv"])

    # ---- Stage 2: Q proj + attention + FFN + LayerNorms -------------------------
    flops2 = 4 * S * S * d_int + 8 * S * D * d_int
    transc2 = S * S + 4 * S
    bytes2 = (S * D * 4                       # x
              + 2 * S * d_int * 2             # k, v (bf16)
              + 4 * D * d_int * 2             # wq, wo, w1, w2 (bf16)
              + (7 * D + 3 * d_int) * 4       # biases / gammas / betas
              + S * D * 4                     # out
              + S * S * 4)                    # attn weights

    out, attn = pl.pallas_call(
        attn_ffn_kernel,
        grid=grid,
        in_specs=[
            pl.BlockSpec((tq, D), lambda i: (i, 0)),     # x block
            _const_spec((D, d_int)),                     # wq (scale folded)
            _const_spec((1, d_int)),                     # bq (scale folded)
            _const_spec((S, d_int)),                     # K (VMEM-resident)
            _const_spec((S, d_int)),                     # V (VMEM-resident)
            _const_spec((d_int, D)),                     # wo
            _const_spec((1, D)),                         # bo
            _const_spec((1, D)),                         # gamma1
            _const_spec((1, D)),                         # beta1
            _const_spec((D, d_int)),                     # w1
            _const_spec((1, d_int)),                     # b1
            _const_spec((d_int, D)),                     # w2
            _const_spec((1, D)),                         # b2
            _const_spec((1, D)),                         # gamma2
            _const_spec((1, D)),                         # beta2
        ],
        out_specs=(
            pl.BlockSpec((tq, D), lambda i: (i, 0)),
            pl.BlockSpec((tq, S), lambda i: (i, 0)),
        ),
        out_shape=(
            jax.ShapeDtypeStruct((S, D), x.dtype),
            jax.ShapeDtypeStruct((S, S), x.dtype),   # module returns attn weights
        ),
        compiler_params=cparams,
        cost_estimate=pl.CostEstimate(
            flops=flops2, transcendentals=transc2, bytes_accessed=bytes2),
    )(x, pp["wq"], pp["bq"], k, v,
      pp["wo"], pp["bo"], pp["g1"], pp["be1"],
      pp["w1"], pp["b1"], pp["w2"], pp["b2"], pp["g2"], pp["be2"])

    return out, attn


# --------------------------------------------------------------------------- #
# Parameters + pure-JAX reference (mirrors the PyTorch forward in f32)
# --------------------------------------------------------------------------- #
def init_params(key, d_model, d_internal):
    """Deterministic synthetic parameters. Linear weights stored as [in, out]
    (already transposed relative to torch nn.Linear's [out, in])."""
    ks = jax.random.split(key, 12)

    def lin(kw, kb, fan_in, fan_out):
        bound = 1.0 / math.sqrt(fan_in)
        w = jax.random.uniform(kw, (fan_in, fan_out), jnp.float32, -bound, bound)
        b = jax.random.uniform(kb, (1, fan_out), jnp.float32, -bound, bound)
        return w, b

    wq, bq = lin(ks[0], ks[1], d_model, d_internal)
    wk, bk = lin(ks[2], ks[3], d_model, d_internal)
    wv, bv = lin(ks[4], ks[5], d_model, d_internal)
    wo, bo = lin(ks[6], ks[7], d_internal, d_model)
    w1, b1 = lin(ks[8], ks[9], d_model, d_internal)
    w2, b2 = lin(ks[10], ks[11], d_internal, d_model)
    return dict(
        wq=wq, bq=bq, wk=wk, bk=bk, wv=wv, bv=bv, wo=wo, bo=bo,
        w1=w1, b1=b1, w2=w2, b2=b2,
        g1=jnp.ones((1, d_model), jnp.float32), be1=jnp.zeros((1, d_model), jnp.float32),
        g2=jnp.ones((1, d_model), jnp.float32), be2=jnp.zeros((1, d_model), jnp.float32),
    )


def reference(x, p):
    q = x @ p["wq"] + p["bq"]
    k = x @ p["wk"] + p["bk"]
    v = x @ p["wv"] + p["bv"]
    aw = jax.nn.softmax(q @ k.T / jnp.sqrt(jnp.float32(k.shape[-1])), axis=-1)
    ao = aw @ v
    h = x + (ao @ p["wo"] + p["bo"])
    h = (h - h.mean(-1, keepdims=True)) / jnp.sqrt(h.var(-1, keepdims=True) + EPS) * p["g1"] + p["be1"]
    f = jnp.maximum(h @ p["w1"] + p["b1"], 0.0) @ p["w2"] + p["b2"]
    h2 = h + f
    h2 = (h2 - h2.mean(-1, keepdims=True)) / jnp.sqrt(h2.var(-1, keepdims=True) + EPS) * p["g2"] + p["be2"]
    return h2, aw


if __name__ == "__main__":
    # Small but lane-dense shapes (multiples of 128 -> unmasked stores, full MXU tiles).
    seq, d_model, d_internal = 256, 128, 128
    key = jax.random.PRNGKey(0)
    kx, kp = jax.random.split(key)
    x = jax.random.normal(kx, (seq, d_model), jnp.float32)
    params = init_params(kp, d_model, d_internal)
    packed = pack_params(params)        # one-time weight packing / casting

    out, attn = transformer_layer(x, packed)
    out, attn = jax.block_until_ready((out, attn))

    ref_out, ref_attn = reference(x, params)
    # bf16 MXU operands -> relaxed tolerances vs the f32 reference.
    assert jnp.allclose(out, ref_out, atol=3e-2, rtol=3e-2), (
        "output mismatch, max abs err = %e" % float(jnp.max(jnp.abs(out - ref_out))))
    assert jnp.allclose(attn, ref_attn, atol=3e-2, rtol=3e-2), (
        "attn mismatch, max abs err = %e" % float(jnp.max(jnp.abs(attn - ref_attn))))
    print("KERNEL_OK")
</pallas_src>

<mosaic_0001>
module attributes {stable_mosaic.version = 11 : i64} {
  func.func @kv_proj_kernel(%arg0: i32, %arg1: memref<128x128xf32, #tpu.memory_space<vmem>>, %arg2: memref<128x256xbf16, #tpu.memory_space<vmem>>, %arg3: memref<1x256xf32, #tpu.memory_space<vmem>>, %arg4: memref<128x128xbf16, #tpu.memory_space<vmem>>, %arg5: memref<128x128xbf16, #tpu.memory_space<vmem>>) attributes {dimension_semantics = [#tpu.dimension_semantics<parallel>], iteration_bounds = array<i64: 2>, scalar_prefetch = 0 : i64, scratch_operands = 0 : i64, tpu.core_type = #tpu.core_type<tc>, window_params = [{transform_indices = @transform_0, window_bounds = array<i64: 128, 128>}, {pipeline_mode = #tpu.pipeline_mode<synchronous>, transform_indices = @transform_1, window_bounds = array<i64: 128, 256>}, {pipeline_mode = #tpu.pipeline_mode<synchronous>, transform_indices = @transform_2, window_bounds = array<i64: 1, 256>}, {transform_indices = @transform_3, window_bounds = array<i64: 128, 128>}, {transform_indices = @transform_4, window_bounds = array<i64: 128, 128>}]} {
    %c0 = arith.constant 0 : index
    %c0_0 = arith.constant 0 : index
    %0 = vector.load %arg1[%c0, %c0_0] : memref<128x128xf32, #tpu.memory_space<vmem>>, vector<128x128xf32>
    %1 = arith.truncf %0 : vector<128x128xf32> to vector<128x128xbf16>
    %c0_1 = arith.constant 0 : index
    %c0_2 = arith.constant 0 : index
    %2 = vector.load %arg2[%c0_1, %c0_2] : memref<128x256xbf16, #tpu.memory_space<vmem>>, vector<128x256xbf16>
    %cst = arith.constant dense<0.000000e+00> : vector<128x256xf32>
    %3 = tpu.matmul %1, %2, %cst {dimension_numbers = #tpu.dot_dimension_numbers<[1], [0], [0], [1], [0, 0, 1, 1], [], []>} : vector<128x128xbf16>, vector<128x256xbf16>, vector<128x256xf32> -> vector<128x256xf32>
    %c0_3 = arith.constant 0 : index
    %c0_4 = arith.constant 0 : index
    %4 = vector.load %arg3[%c0_3, %c0_4] : memref<1x256xf32, #tpu.memory_space<vmem>>, vector<1x256xf32>
    %5 = vector.broadcast %4 : vector<1x256xf32> to vector<128x256xf32>
    %6 = arith.addf %3, %5 : vector<128x256xf32>
    %7 = vector.extract_strided_slice %6 {offsets = [0, 0], sizes = [128, 128], strides = [1, 1]} : vector<128x256xf32> to vector<128x128xf32>
    %8 = arith.truncf %7 : vector<128x128xf32> to vector<128x128xbf16>
    %c0_5 = arith.constant 0 : index
    %c0_6 = arith.constant 0 : index
    %9 = vector.load %arg4[%c0_5, %c0_6] : memref<128x128xbf16, #tpu.memory_space<vmem>>, vector<128x128xbf16>
    tpu.vector_store %arg4[%c0_5, %c0_6], %8 {strides = array<i32>} : memref<128x128xbf16, #tpu.memory_space<vmem>>, vector<128x128xbf16>,
    %10 = vector.extract_strided_slice %6 {offsets = [0, 128], sizes = [128, 128], strides = [1, 1]} : vector<128x256xf32> to vector<128x128xf32>
    %11 = arith.truncf %10 : vector<128x128xf32> to vector<128x128xbf16>
    %c0_7 = arith.constant 0 : index
    %c0_8 = arith.constant 0 : index
    %12 = vector.load %arg5[%c0_7, %c0_8] : memref<128x128xbf16, #tpu.memory_space<vmem>>, vector<128x128xbf16>
    tpu.vector_store %arg5[%c0_7, %c0_8], %11 {strides = array<i32>} : memref<128x128xbf16, #tpu.memory_space<vmem>>, vector<128x128xbf16>,
    return
  }
  func.func @transform_0(%arg0: i32) -> (i32, i32) {
    %c0_i32 = arith.constant 0 : i32
    %c0_i32_0 = arith.constant 0 : i32
    return %arg0, %c0_i32 : i32, i32
  }
  func.func @transform_1(%arg0: i32) -> (i32, i32) {
    %c0_i32 = arith.constant 0 : i32
    %c0_i32_0 = arith.constant 0 : i32
    %c0_i32_1 = arith.constant 0 : i32
    return %c0_i32, %c0_i32_0 : i32, i32
  }
  func.func @transform_2(%arg0: i32) -> (i32, i32) {
    %c0_i32 = arith.constant 0 : i32
    %c0_i32_0 = arith.constant 0 : i32
    %c0_i32_1 = arith.constant 0 : i32
    return %c0_i32, %c0_i32_0 : i32, i32
  }
  func.func @transform_3(%arg0: i32) -> (i32, i32) {
    %c0_i32 = arith.constant 0 : i32
    %c0_i32_0 = arith.constant 0 : i32
    return %arg0, %c0_i32 : i32, i32
  }
  func.func @transform_4(%arg0: i32) -> (i32, i32) {
    %c0_i32 = arith.constant 0 : i32
    %c0_i32_0 = arith.constant 0 : i32
    return %arg0, %c0_i32 : i32, i32
  }
}

</mosaic_0001>

<bundles_post_ra>
// kernel: tpu_custom_call.1
= control target key start
LH: loop header
LB: loop body
LE: loop exit
PB: predicated region body
PF: predicated region fallthrough
CT: control target
= control target key end

     0   :  { %10 = vsyncpa [#allocation3], 0  ;;  %s1598_s0 = inlined_call_operand.hbm [shape: f32[256,128], index: 0, kind: input, shape index: {}]   ;;  %s1599_s1 = inlined_call_operand.hbm [shape: bf16[128,256], index: 1, kind: input, shape index: {}]   ;;  %s1600_s2 = inlined_call_operand.vmem [shape: f32[1,256], index: 2, kind: input, shape index: {}]   ;;  %s1601_s3 = inlined_call_operand.hbm [shape: bf16[256,128], index: 3, kind: output, shape index: {0}]   ;;  %s1602_s4 = inlined_call_operand.hbm [shape: bf16[256,128], index: 4, kind: output, shape index: {1}]  }
   0x1   :  { %12 = vsyncpa [#allocation3 + $0x1], 0 }
   0x2   :  { %13 = vsyncpa [#allocation6], 0 }
   0x3   :  { %14 = vsyncpa [#allocation4], 0 }
   0x4   :  { %16 = vsyncpa [#allocation4 + $0x1], 0 }
   0x5   :  { %17 = vsyncpa [#allocation9], 0 }
   0x6   :  { %19 = vsyncpa [#allocation9 + $0x1], 0  ;;  %s1293_s15 = smov 0   ;;  %s1295_s16 = smov 0  }
   0x7   :  { %s1297_s17 = smov 0   ;;  %s1299_s18 = smov 0  }
   0x8 LB: > { %s1314_s19 = sadd.s32 4294967295, %s1257_s18   ;;  %s801_s20 = sadd.s32 4294967294, %s1257_s18   ;;  %s1257_s18 = sphi %s1299_s18, %s1624_s18   ;;  %s1253_s17 = sphi %s1297_s17, %s1623_s17   ;;  %s1249_s16 = sphi %s1295_s16, %s1622_s16   ;;  %s1245_s15 = sphi %s1293_s15, %s1621_s15  }
   0x9   : > { %p45_p0 = scmp.ne.s32.totalorder %s1249_s16, %s1245_s15  ;;  %p1603_p1 = scmp.eq.s32.totalorder %s1314_s19, 0 }
   0xa   : > { %p117_p3 = scmp.eq.s32.totalorder %s801_s20, 1  ;;  %p802_p5 = scmp.ge.s32.totalorder %s1257_s18, 1 }
   0xb   : > { %p1323_p4 = por %p1603_p1, %p45_p0  ;;  %p150_p7 = scmp.lt.s32.totalorder %s1257_s18, 3 }
   0xc   : > { %p1328_p6 = por %p117_p3, %p45_p0  ;;  %s1259_s24 = smov [#allocation5]  }
   0xd   : > { %s1607_s21 = scalar_select %p1323_p4, 1, 0 }
   0xe   : > { %s1608_s22 = scalar_select %p1328_p6, 1, 0 }
   0xf   : > { %p1333_p8 = pnand %p802_p5, %p150_p7  ;;  %s162_s25 = sshll.u32 %s1259_s24, 4  ;;  %s163_s25 = int_to_ptr.vmem [resolvable:$true] %s162_s25 }
  0x10   : > { %s1347_s27 = sadd.s32 1, %s1257_s18   ;;  %s32_s28 = sadd.s32 1, %s1253_s17 }
  0x11   : > { %s1609_s23 = scalar_select %p1333_p8, 1, 0 }
  0x12   : > { %p1024_p9 = pneg %p1333_p8  ;;  %s29_s29 = ssub.s32 %s1257_s18, %s1347_s27 }
  0x13   : > { %s1116_s30 = scalar_lea.vmem %s163_s25, 2048  ;;  %p1124_p5 = scmp.lt.s32.totalorder %s163_s25, %s163_s25 }
  0x14   : > { %p1342_p11 = pnand %p1024_p9, %p1603_p1  ;;  %p1117_p13 = scmp.ne.s32.totalorder %s163_s25, %s1116_s30 }
  0x15   : > { %p1125_p7 = scmp.lt.s32.totalorder %s1116_s30, %s1116_s30 }
  0x16   : > { %p1107_p12 = pneg %p1342_p11 }
  0x17   : > { %p1126_p10 = por %p1125_p7, %p1124_p5 }
  0x18   : > { %p1119_p0 = pnand %p1117_p13, %p1107_p12 }
  0x1a   : > { %p1120_p3 = pneg %p1119_p0 }
  0x1c   : > { %p1127_p2 = pnand %p1126_p10, %p1120_p3 }
  0x1e   : > { %1130 = shalt.err (!%p1127_p2)
}
  0x1f   : > { %s1260_s5 = smov 128   ;;  %s1261_s6 = smov 8  }
  0x20   : > { %1027 = dma.hbm_to_vmem [thread:$0]  (!%p1342_p11), %s1599_s1, 2048, %s163_s25, [#allocation6], %s1260_s5, %s1260_s5, %s1261_s6  }
  0x21   : > { %p30_p2 = scmp.eq.s32.totalorder %s29_s29, 0  ;;  %p39_p9 = scmp.ne.s32.totalorder %s1253_s17, %s1249_s16 }
  0x22   : > { %p40_p10 = scmp.eq.s32.totalorder %s1257_s18, 0  ;;  %p1040_p12 = scmp.lt.s32.totalorder %s1257_s18, 2 }
  0x23   : > { %s1367_s9 = scalar_select %p30_p2, %s1253_s17, %s32_s28  }
  0x24   : > { %p41_p13 = por %p40_p10, %p39_p9  ;;  %p1611_p0 = scmp.eq.s32.totalorder %s1314_s19, 1 }
  0x25   : > { %s179_s11 = sand.u32 1, %s1253_s17   ;;  %s869_s12 = sshll.u32 %s1257_s18, 11 }
  0x26   : > { %p1371_p3 = por %p1611_p0, %p39_p9  ;;  %s805_s13 = sshll.u32 %s179_s11, 7 }
  0x27   : > { %s1380_s24 = scalar_lea.hbm %s1598_s0, %s869_s12  ;;  %s183_s25 = scalar_lea.vmem [#allocation2], %s805_s13 }
  0x28   : > { %s1612_s10 = scalar_select %p1371_p3, 1, 0 }
  0x29   : > { %s190_s26 = sshll.u32 %s183_s25, 4  ;;  %p1382_p11 = pnand %p1040_p12, %p41_p13  ;;  %s1386_s26 = int_to_ptr.vmem [resolvable:$true] %s190_s26 }
  0x2a   : > { %s1388_s29 = scalar_lea.sflag [#allocation3], %s179_s11  ;;  %s1131_s30 = scalar_lea.hbm %s1380_s24, 2048 }
  0x2b   : > { %p1132_p5 = scmp.ne.s32.totalorder %s1380_s24, %s1131_s30  ;;  %p1133_p7 = pneg %p1382_p11 }
  0x2c   : > { %s1136_s12 = scalar_lea.hbm %s1598_s0, 4096  ;;  %p1137_p10 = scmp.lt.s32.totalorder %s1380_s24, %s1598_s0 }
  0x2d   : > { %p1134_p2 = pnand %p1133_p7, %p1132_p5  ;;  %p1138_p12 = scmp.lt.s32.totalorder %s1136_s12, %s1131_s30 }
  0x2f   : > { %p1135_p9 = pneg %p1134_p2  ;;  %p1139_p13 = por %p1138_p12, %p1137_p10 }
  0x31   : > { %p1140_p0 = pnand %p1139_p13, %p1135_p9 }
  0x33   : > { %1143 = shalt.err (!%p1140_p0)
}
  0x34   : > { %s1144_s11 = scalar_lea.vmem %s1386_s26, 2048  ;;  %s1262_s20 = smov [#allocation2]  }
  0x35   : > { %p1145_p1 = scmp.ne.s32.totalorder %s1386_s26, %s1144_s11  ;;  %s1149_s25 = sshll.u32 %s1262_s20, 4  ;;  %s1150_s25 = int_to_ptr.vmem [resolvable:$false] %s1149_s25 }
  0x36   : > { %s1151_s7 = scalar_lea.vmem %s1150_s25, 4096  ;;  %p1152_p2 = scmp.lt.s32.totalorder %s1386_s26, %s1150_s25 }
  0x37   : > { %p1147_p6 = pnand %p1145_p1, %p1133_p7  ;;  %p1153_p3 = scmp.lt.s32.totalorder %s1151_s7, %s1144_s11 }
  0x39   : > { %p1148_p5 = pneg %p1147_p6  ;;  %p1154_p4 = por %p1153_p3, %p1152_p2 }
  0x3b   : > { %p1155_p8 = pnand %p1154_p4, %p1148_p5 }
  0x3d   : > { %1158 = shalt.err (!%p1155_p8)
}
  0x3e   : > { %1031 = dma.hbm_to_vmem [thread:$0]  (!%p1382_p11), %s1380_s24, 2048, %s1386_s26, %s1388_s29, %s1260_s5, %s1260_s5, %s1261_s6  }
  0x3f   : > { %p1614_p1 = scmp.ne.s32.totalorder %s1609_s23, 0 }
  0x40   : > { %s1415_s30 = sand.u32 (!%p1614_p1), 1, %s1249_s16   ;;  %p1615_p4 = scmp.ne.s32.totalorder (!%p1614_p1), %s1607_s21, 0 }
  0x41   : > { %202 = sbr.rel (%p1614_p1) target bundleno = 369 (0x171), region = 32  ;;  %s809_s8 = sshll.u32 (!%p1614_p1), %s1415_s30, 7 }
  0x42   : > { %s205_s12 = scalar_lea.sflag (!%p1614_p1), [#allocation3], %s1415_s30  ;;  %s1419_s13 = scalar_lea.vmem (!%p1614_p1), [#allocation2], %s809_s8 }
  0x46   : > { %1228 = dma.done.wait (%p1615_p4), %s205_s12, 2048  }
  0x47   : > { %1230 = vsyncadd (%p1615_p4), %s205_s12, 4294965248  ;;  %p1616_p6 = scmp.eq.s32.totalorder %s1314_s19, 0 }
  0x49   : > { %1232 = dma.done.wait (%p1616_p6), [#allocation6], 2048   ;;  %p1617_p8 = pmov %p1616_p6 }
  0x4a   : > { %v1263_v0 = vmov 0   ;;  %v1081_v1 = vld [vmem:[#allocation5 + $0x74] ss:$8 sps:$4 sm:$0xff]   ;;  %v1083_v2 = vld [vmem:[#allocation5 + $0x70] ss:$8 sps:$4 sm:$0xff]   ;;  %v246_v17 = vld [vmem:[%s1419_s13] sm:$0xff]  ;;  %v288_v41 = vlaneseq }
  0x4b   : > { %1234 = vsyncadd (%p1617_p8), [#allocation6], 4294965248  ;;  %410 = vmatprep.mubr.bf16.mxu0 %v1263_v0  ;;  %450 = vmatprep.mubr.bf16.mxu1 %v1263_v0  ;;  %v1084_v3 = vld [vmem:[#allocation5 + $0x64] ss:$8 sps:$4 sm:$0xff]   ;;  %v1086_v4 = vld [vmem:[#allocation5 + $0x60] ss:$8 sps:$4 sm:$0xff]  }
  0x4c   : > { %378 = vmatprep.subr.bf16.mxu0 %v1081_v1  ;;  %998 = vmatprep.subr.bf16.mxu1 %v1081_v1  ;;  %v1087_v5 = vld [vmem:[#allocation5 + $0x54] ss:$8 sps:$4 sm:$0xff]   ;;  %v1089_v6 = vld [vmem:[#allocation5 + $0x50] ss:$8 sps:$4 sm:$0xff]   ;;  %v1090_v7 = vld [vmem:[#allocation5 + $0x44] ss:$8 sps:$4 sm:$0xff]  }
  0x4d   : > { %379 = vmatpush1.bf16.msra.mxu0 %v1083_v2  ;;  %1006 = vmatpush1.bf16.msra.mxu1 %v1083_v2  ;;  %v1092_v8 = vld [vmem:[#allocation5 + $0x40] ss:$8 sps:$4 sm:$0xff]   ;;  %v1093_v9 = vld [vmem:[#allocation5 + $0x34] ss:$8 sps:$4 sm:$0xff]   ;;  %v1095_v10 = vld [vmem:[#allocation5 + $0x30] ss:$8 sps:$4 sm:$0xff]  }
  0x4e   : > { %380 = vmatprep.subr.bf16.mxu0 %v1084_v3  ;;  %999 = vmatprep.subr.bf16.mxu1 %v1084_v3  ;;  %v1096_v11 = vld [vmem:[#allocation5 + $0x24] ss:$8 sps:$4 sm:$0xff]   ;;  %v1098_v12 = vld [vmem:[#allocation5 + $0x20] ss:$8 sps:$4 sm:$0xff]   ;;  %v1099_v13 = vld [vmem:[#allocation5 + $0x14] ss:$8 sps:$4 sm:$0xff]  }
  0x4f   : > { %v1101_v14 = vld [vmem:[#allocation5 + $0x10] ss:$8 sps:$4 sm:$0xff]   ;;  %v1102_v15 = vld [vmem:[#allocation5 + $0x4] ss:$8 sps:$4 sm:$0xff]   ;;  %v1104_v16 = vld [vmem:[#allocation5] ss:$8 sps:$4 sm:$0xff]  }
  0x50   : > { %v247_v18 = vld [vmem:[%s1419_s13 + $0x8] sm:$0xff]  ;;  %v254_v19 = vld [vmem:[%s1419_s13 + $0x40] sm:$0xff]  ;;  %v248_v23 = vld [vmem:[%s1419_s13 + $0x10] sm:$0xff]  ;;  %v289_v42 = vshrl.u32 %v288_v41, 7  ;;  %s811_s5 = sshll.u32 %s1415_s30, 6  ;;  %s902_s28 = sshll.u32 %s1314_s19, 10 }
  0x51   : > { %381 = vmatpush1.bf16.msra.mxu0 %v1086_v4  ;;  %1007 = vmatpush1.bf16.msra.mxu1 %v1086_v4  ;;  %v255_v20 = vld [vmem:[%s1419_s13 + $0x48] sm:$0xff]  ;;  %v262_v21 = vpack.c.bf16 %v247_v18, %v246_v17  ;;  %v249_v24 = vld [vmem:[%s1419_s13 + $0x18] sm:$0xff]  ;;  %v256_v25 = vld [vmem:[%s1419_s13 + $0x50] sm:$0xff]  ;;  %s1469_s6 = scalar_lea.vmem [#allocation7], %s811_s5  ;;  %s1473_s24 = scalar_lea.vmem [#allocation8], %s811_s5 }
  0x52   : > { %382 = vmatprep.subr.bf16.mxu0 %v1087_v5  ;;  %1000 = vmatprep.subr.bf16.mxu1 %v1087_v5  ;;  %v266_v22 = vpack.c.bf16 %v255_v20, %v254_v19  ;;  %v257_v26 = vld [vmem:[%s1419_s13 + $0x58] sm:$0xff]  ;;  %v263_v27 = vpack.c.bf16 %v249_v24, %v248_v23  ;;  %v250_v29 = vld [vmem:[%s1419_s13 + $0x20] sm:$0xff]  ;;  %v251_v30 = vld [vmem:[%s1419_s13 + $0x28] sm:$0xff]  ;;  %v290_v43 = vsub.s32 0, %v289_v42  ;;  %v294_v45 = vsub.s32 1, %v289_v42  ;;  %s670_s26 = sshll.u32 %s1469_s6, 4  ;;  %s1515_s11 = scalar_lea.hbm %s1601_s3, %s902_s28  ;;  %s1503_s26 = int_to_ptr.vmem [resolvable:$true] %s670_s26 }
  0x53   : > { %v267_v28 = vpack.c.bf16 %v257_v26, %v256_v25  ;;  %v258_v31 = vld [vmem:[%s1419_s13 + $0x60] sm:$0xff]  ;;  %v259_v32 = vld [vmem:[%s1419_s13 + $0x68] sm:$0xff]  ;;  %v264_v33 = vpack.c.bf16 %v251_v30, %v250_v29  ;;  %v252_v35 = vld [vmem:[%s1419_s13 + $0x30] sm:$0xff]  ;;  %s686_s29 = sshll.u32 %s1473_s24, 4  ;;  %s1526_s7 = scalar_lea.hbm %s1602_s4, %s902_s28  ;;  %s1519_s29 = int_to_ptr.vmem [resolvable:$true] %s686_s29 }
  0x54   : > { %v268_v34 = vpack.c.bf16 %v259_v32, %v258_v31  ;;  %v253_v36 = vld [vmem:[%s1419_s13 + $0x38] sm:$0xff]  ;;  %v260_v37 = vld [vmem:[%s1419_s13 + $0x70] sm:$0xff]  ;;  %v286_v44 = vld [vmem:[%s1600_s2] sm:$0x3]  ;;  %s652_s8 = scalar_lea.sflag [#allocation4], %s1415_s30  ;;  %s1159_s12 = scalar_lea.vmem %s1503_s26, 1024 }
  0x55   : > { %383 = vmatpush1.bf16.msra.mxu0 %v1089_v6  ;;  %1008 = vmatpush1.bf16.msra.mxu1 %v1089_v6  ;;  %v261_v38 = vld [vmem:[%s1419_s13 + $0x78] sm:$0xff]  ;;  %v265_v39 = vpack.c.bf16 %v253_v36, %v252_v35  ;;  %v1456_v48 = vrot.slane %v286_v44, %v290_v43  ;;  %v1458_v49 = vrot.slane %v286_v44, %v294_v45  ;;  %p1160_p3 = scmp.ne.s32.totalorder %s1503_s26, %s1159_s12  ;;  %p1618_p11 = scmp.ne.s32.totalorder %s1612_s10, 0 }
  0x56   : > { %384 = vmatprep.subr.bf16.mxu0 %v1090_v7  ;;  %1001 = vmatprep.subr.bf16.mxu1 %v1090_v7  ;;  %v269_v40 = vpack.c.bf16 %v261_v38, %v260_v37  ;;  %s1264_s13 = smov [#allocation7]  }
  0x57   : > { %p1161_p7 = pnand %p1160_p3, %p1618_p11  ;;  %s1163_s21 = sshll.u32 %s1264_s13, 4  ;;  %s1164_s21 = int_to_ptr.vmem [resolvable:$false] %s1163_s21 }
  0x58   : > { %s1165_s23 = scalar_lea.vmem %s1164_s21, 2048  ;;  %p1166_p10 = scmp.lt.s32.totalorder %s1503_s26, %s1164_s21 }
  0x59   : > { %385 = vmatpush1.bf16.msra.mxu0 %v1092_v8  ;;  %1009 = vmatpush1.bf16.msra.mxu1 %v1092_v8  ;;  %p1162_p9 = pneg %p1161_p7  ;;  %p1167_p12 = scmp.lt.s32.totalorder %s1165_s23, %s1159_s12 }
  0x5a   : > { %386 = vmatprep.subr.bf16.mxu0 %v1093_v9  ;;  %1002 = vmatprep.subr.bf16.mxu1 %v1093_v9 }
  0x5b   : > { %p1168_p13 = por %p1167_p12, %p1166_p10 }
  0x5d   : > { %387 = vmatpush1.bf16.msra.mxu0 %v1095_v10  ;;  %1010 = vmatpush1.bf16.msra.mxu1 %v1095_v10  ;;  %p1169_p0 = pnand %p1168_p13, %p1162_p9 }
  0x5e   : > { %388 = vmatprep.subr.bf16.mxu0 %v1096_v11  ;;  %1003 = vmatprep.subr.bf16.mxu1 %v1096_v11 }
  0x61   : > { %389 = vmatpush1.bf16.msra.mxu0 %v1098_v12  ;;  %1011 = vmatpush1.bf16.msra.mxu1 %v1098_v12 }
  0x62   : > { %390 = vmatprep.subr.bf16.mxu0 %v1099_v13  ;;  %1004 = vmatprep.subr.bf16.mxu1 %v1099_v13 }
  0x65   : > { %391 = vmatpush1.bf16.msra.mxu0 %v1101_v14  ;;  %1012 = vmatpush1.bf16.msra.mxu1 %v1101_v14 }
  0x66   : > { %392 = vmatprep.subr.bf16.mxu0 %v1102_v15  ;;  %1005 = vmatprep.subr.bf16.mxu1 %v1102_v15 }
  0x69   : > { %393 = vmatpush1.bf16.msra.mxu0 %v1104_v16  ;;  %1013 = vmatpush1.bf16.msra.mxu1 %v1104_v16 }
  0x6c   : > { %411 = vmatmul.mubr.bf16.vlgmr.msra.gmra.mxu0 %v262_v21  ;;  %451 = vmatmul.mubr.bf16.vlgmr.msra.gmra.mxu1 %v266_v22 }
  0x6d   : > { %420 = vmatprep.mubr.bf16.mxu0 %v1263_v0  ;;  %460 = vmatprep.mubr.bf16.mxu1 %v1263_v0 }
  0x74   : > { %421 = vmatmul.mubr.bf16.gmra.mxu0 %v263_v27  ;;  %461 = vmatmul.mubr.bf16.gmra.mxu1 %v267_v28 }
  0x75   : > { %430 = vmatprep.mubr.bf16.mxu0 %v1263_v0  ;;  %470 = vmatprep.mubr.bf16.mxu1 %v1263_v0 }
  0x7c   : > { %431 = vmatmul.mubr.bf16.gmra.mxu0 %v264_v33  ;;  %471 = vmatmul.mubr.bf16.gmra.mxu1 %v268_v34 }
  0x7d   : > { %440 = vmatprep.mubr.bf16.mxu0 %v1263_v0  ;;  %480 = vmatprep.mubr.bf16.mxu1 %v1263_v0 }
  0x84   : > { %441 = vmatmul.mubr.bf16.gmra.mxu0 %v265_v39  ;;  %481 = vmatmul.mubr.bf16.gmra.mxu1 %v269_v40 }
 0x12c   : > { %v412_v46 = vpop.f32.mrf.mxu0  ;;  %v452_v47 = vpop.f32.mrf.mxu1 }
 0x12d   : > { %v413_v54 = vadd.f32 %v412_v46, %v1456_v48  ;;  %v453_v55 = vadd.f32 %v452_v47, %v1456_v48 }
 0x12e   : > { %v414_v50 = vpop.f32.mrf.mxu0  ;;  %v454_v51 = vpop.f32.mrf.mxu1 }
 0x12f   : > { %v415_v58 = vadd.f32 %v414_v50, %v1458_v49  ;;  %v455_v59 = vadd.f32 %v454_v51, %v1458_v49 }
 0x130   : > { %v416_v52 = vpop.f32.mrf.mxu0  ;;  %v456_v53 = vpop.f32.mrf.mxu1 }
 0x131   : > { %v417_v56 = vadd.f32 %v416_v52, %v1456_v48  ;;  %v457_v57 = vadd.f32 %v456_v53, %v1456_v48 }
 0x132   : > { %v418_v60 = vpop.f32.mrf.mxu0  ;;  %v458_v61 = vpop.f32.mrf.mxu1 }
 0x133   : > { %v907_v62 = vpack.c.bf16 %v417_v56, %v413_v54  ;;  %v927_v63 = vpack.c.bf16 %v457_v57, %v453_v55  ;;  %v419_v0 = vadd.f32 %v418_v60, %v1458_v49  ;;  %v459_v1 = vadd.f32 %v458_v61, %v1458_v49 }
 0x134   : > { %v422_v2 = vpop.f32.mrf.mxu0  ;;  %v462_v3 = vpop.f32.mrf.mxu1 }
 0x135   : > { %908 = vst [vmem:[%s1469_s6] sm:$0xff] %v907_v62   ;;  %987 = vst [vmem:[%s1469_s6 + $0x20] sm:$0xff] %v927_v63   ;;  %v947_v4 = vpack.c.bf16 %v419_v0, %v415_v58  ;;  %v967_v5 = vpack.c.bf16 %v459_v1, %v455_v59  ;;  %v423_v10 = vadd.f32 %v422_v2, %v1456_v48 }
 0x136   : > { %v424_v6 = vpop.f32.mrf.mxu0  ;;  %v464_v7 = vpop.f32.mrf.mxu1  ;;  %v463_v11 = vadd.f32 %v462_v3, %v1456_v48 }
 0x137   : > { %948 = vst [vmem:[%s1473_s24] sm:$0xff] %v947_v4   ;;  %994 = vst [vmem:[%s1473_s24 + $0x20] sm:$0xff] %v967_v5   ;;  %v425_v14 = vadd.f32 %v424_v6, %v1458_v49  ;;  %v465_v15 = vadd.f32 %v464_v7, %v1458_v49 }
 0x138   : > { %v426_v8 = vpop.f32.mrf.mxu0  ;;  %v466_v9 = vpop.f32.mrf.mxu1 }
 0x139   : > { %v427_v12 = vadd.f32 %v426_v8, %v1456_v48  ;;  %v467_v13 = vadd.f32 %v466_v9, %v1456_v48 }
 0x13a   : > { %v428_v16 = vpop.f32.mrf.mxu0  ;;  %v468_v17 = vpop.f32.mrf.mxu1 }
 0x13b   : > { %v912_v18 = vpack.c.bf16 %v427_v12, %v423_v10  ;;  %v932_v19 = vpack.c.bf16 %v467_v13, %v463_v11  ;;  %v429_v20 = vadd.f32 %v428_v16, %v1458_v49  ;;  %v469_v21 = vadd.f32 %v468_v17, %v1458_v49 }
 0x13c   : > { %v432_v22 = vpop.f32.mrf.mxu0  ;;  %v472_v23 = vpop.f32.mrf.mxu1 }
 0x13d   : > { %984 = vst [vmem:[%s1469_s6 + $0x8] sm:$0xff] %v912_v18   ;;  %988 = vst [vmem:[%s1469_s6 + $0x28] sm:$0xff] %v932_v19   ;;  %v952_v24 = vpack.c.bf16 %v429_v20, %v425_v14  ;;  %v972_v25 = vpack.c.bf16 %v469_v21, %v465_v15  ;;  %v433_v30 = vadd.f32 %v432_v22, %v1456_v48 }
 0x13e   : > { %v434_v26 = vpop.f32.mrf.mxu0  ;;  %v474_v27 = vpop.f32.mrf.mxu1  ;;  %v473_v31 = vadd.f32 %v472_v23, %v1456_v48 }
 0x13f   : > { %991 = vst [vmem:[%s1473_s24 + $0x8] sm:$0xff] %v952_v24   ;;  %995 = vst [vmem:[%s1473_s24 + $0x28] sm:$0xff] %v972_v25   ;;  %v435_v34 = vadd.f32 %v434_v26, %v1458_v49  ;;  %v475_v35 = vadd.f32 %v474_v27, %v1458_v49 }
 0x140   : > { %v436_v28 = vpop.f32.mrf.mxu0  ;;  %v476_v29 = vpop.f32.mrf.mxu1 }
 0x141   : > { %v437_v32 = vadd.f32 %v436_v28, %v1456_v48  ;;  %v477_v33 = vadd.f32 %v476_v29, %v1456_v48 }
 0x142   : > { %v438_v36 = vpop.f32.mrf.mxu0  ;;  %v478_v37 = vpop.f32.mrf.mxu1 }
 0x143   : > { %v917_v38 = vpack.c.bf16 %v437_v32, %v433_v30  ;;  %v937_v39 = vpack.c.bf16 %v477_v33, %v473_v31  ;;  %v439_v40 = vadd.f32 %v438_v36, %v1458_v49  ;;  %v479_v41 = vadd.f32 %v478_v37, %v1458_v49 }
 0x144   : > { %v442_v42 = vpop.f32.mrf.mxu0  ;;  %v482_v43 = vpop.f32.mrf.mxu1 }
 0x145   : > { %985 = vst [vmem:[%s1469_s6 + $0x10] sm:$0xff] %v917_v38   ;;  %989 = vst [vmem:[%s1469_s6 + $0x30] sm:$0xff] %v937_v39   ;;  %v957_v44 = vpack.c.bf16 %v439_v40, %v435_v34  ;;  %v977_v45 = vpack.c.bf16 %v479_v41, %v475_v35  ;;  %v443_v52 = vadd.f32 %v442_v42, %v1456_v48 }
 0x146   : > { %v444_v46 = vpop.f32.mrf.mxu0  ;;  %v484_v47 = vpop.f32.mrf.mxu1  ;;  %v483_v53 = vadd.f32 %v482_v43, %v1456_v48 }
 0x147   : > { %992 = vst [vmem:[%s1473_s24 + $0x10] sm:$0xff] %v957_v44   ;;  %996 = vst [vmem:[%s1473_s24 + $0x30] sm:$0xff] %v977_v45   ;;  %v445_v56 = vadd.f32 %v444_v46, %v1458_v49  ;;  %v485_v57 = vadd.f32 %v484_v47, %v1458_v49 }
 0x148   : > { %v446_v50 = vpop.f32.mrf.mxu0  ;;  %v486_v51 = vpop.f32.mrf.mxu1 }
 0x149   : > { %v447_v54 = vadd.f32 %v446_v50, %v1456_v48  ;;  %v487_v55 = vadd.f32 %v486_v51, %v1456_v48 }
 0x14a   : > { %v448_v58 = vpop.f32.mrf.mxu0  ;;  %v488_v59 = vpop.f32.mrf.mxu1 }
 0x14b   : > { %v922_v60 = vpack.c.bf16 %v447_v54, %v443_v52  ;;  %v942_v61 = vpack.c.bf16 %v487_v55, %v483_v53  ;;  %v449_v62 = vadd.f32 %v448_v58, %v1458_v49  ;;  %v489_v48 = vadd.f32 %v488_v59, %v1458_v49 }
 0x14d   : > { %986 = vst [vmem:[%s1469_s6 + $0x18] sm:$0xff] %v922_v60   ;;  %990 = vst [vmem:[%s1469_s6 + $0x38] sm:$0xff] %v942_v61   ;;  %v962_v63 = vpack.c.bf16 %v449_v62, %v445_v56  ;;  %v982_v0 = vpack.c.bf16 %v489_v48, %v485_v57 }
 0x14e   : > { %1172 = shalt.err (!%p1169_p0)
}
 0x14f   : > { %s1173_s5 = scalar_lea.hbm %s1515_s11, 1024  ;;  %s1177_s19 = scalar_lea.hbm %s1601_s3, 2048 }
 0x150   : > { %p1174_p5 = scmp.ne.s32.totalorder %s1515_s11, %s1173_s5  ;;  %p1178_p4 = scmp.lt.s32.totalorder %s1515_s11, %s1601_s3 }
 0x151   : > { %p1179_p6 = scmp.lt.s32.totalorder %s1177_s19, %s1173_s5 }
 0x152   : > { %p1175_p2 = pnand %p1174_p5, %p1618_p11 }
 0x153   : > { %p1180_p8 = por %p1179_p6, %p1178_p4 }
 0x154   : > { %p1176_p1 = pneg %p1175_p2 }
 0x156   : > { %p1181_p3 = pnand %p1180_p8, %p1176_p1 }
 0x158   : > { %1184 = shalt.err (!%p1181_p3)
}
 0x159   : > { %s1265_s25 = smov 64   ;;  %s1266_s12 = smov 4   ;;  %993 = vst [vmem:[%s1473_s24 + $0x18] sm:$0xff] %v962_v63   ;;  %997 = vst [vmem:[%s1473_s24 + $0x38] sm:$0xff] %v982_v0  }
 0x15a   : > { %1020 = dma.vmem_to_hbm [thread:$0]  (%p1618_p11), %s1503_s26, 1024, %s1515_s11, %s652_s8, %s1265_s25, %s1265_s25, %s1266_s12  }
 0x15b   : > { %s657_s13 = scalar_lea.sflag [#allocation9], %s1415_s30  ;;  %s1185_s21 = scalar_lea.vmem %s1519_s29, 1024 }
 0x15c   : > { %p1186_p7 = scmp.ne.s32.totalorder %s1519_s29, %s1185_s21  ;;  %s1267_s23 = smov [#allocation8]  }
 0x15d   : > { %s1189_s5 = sshll.u32 %s1267_s23, 4  ;;  %s1190_s5 = int_to_ptr.vmem [resolvable:$false] %s1189_s5 }
 0x15e   : > { %p1187_p9 = pnand %p1186_p7, %p1618_p11  ;;  %s1191_s6 = scalar_lea.vmem %s1190_s5, 2048 }
 0x15f   : > { %p1192_p12 = scmp.lt.s32.totalorder %s1519_s29, %s1190_s5  ;;  %p1193_p13 = scmp.lt.s32.totalorder %s1191_s6, %s1185_s21 }
 0x160   : > { %p1188_p10 = pneg %p1187_p9 }
 0x161   : > { %p1194_p0 = por %p1193_p13, %p1192_p12 }
 0x163   : > { %p1195_p5 = pnand %p1194_p0, %p1188_p10 }
 0x165   : > { %1198 = shalt.err (!%p1195_p5)
}
 0x166   : > { %s1199_s24 = scalar_lea.hbm %s1526_s7, 1024  ;;  %s1203_s11 = scalar_lea.hbm %s1602_s4, 2048 }
 0x167   : > { %p1200_p2 = scmp.ne.s32.totalorder %s1526_s7, %s1199_s24  ;;  %p1204_p6 = scmp.lt.s32.totalorder %s1526_s7, %s1602_s4 }
 0x168   : > { %p1205_p8 = scmp.lt.s32.totalorder %s1203_s11, %s1199_s24 }
 0x169   : > { %p1201_p1 = pnand %p1200_p2, %p1618_p11 }
 0x16a   : > { %p1206_p3 = por %p1205_p8, %p1204_p6 }
 0x16b   : > { %p1202_p4 = pneg %p1201_p1 }
 0x16d   : > { %p1207_p7 = pnand %p1206_p3, %p1202_p4 }
 0x16f   : > { %1210 = shalt.err (!%p1207_p7)
}
 0x170   : > { %1021 = dma.vmem_to_hbm [thread:$0]  (%p1618_p11), %s1519_s29, 1024, %s1526_s7, %s657_s13, %s1265_s25, %s1265_s25, %s1266_s12  }
 0x171 PF: > { %s701_s19 = sand.u32 1, %s1245_s15   ;;  %p1619_p9 = scmp.ne.s32.totalorder %s1608_s22, 0 }
 0x172   : > { %p1620_p10 = scmp.ge.s32.totalorder %s1257_s18, 2  ;;  %s702_s14 = scalar_lea.sflag [#allocation4], %s701_s19 }
 0x174   : > { %p1033_p12 = pnand %p1620_p10, %p1619_p9 }
 0x176   : > { %p1034_p13 = pneg %p1033_p12 }
 0x178   : > { %1236 = dma.done.wait (%p1034_p13), %s702_s14, 1024  }
 0x179   : > { %1238 = vsyncadd (%p1034_p13), %s702_s14, 4294966272  ;;  %s711_s20 = scalar_lea.sflag [#allocation9], %s701_s19 }
 0x17a   : > { %1240 = dma.done.wait (%p1034_p13), %s711_s20, 1024  }
 0x17b   : > { %1242 = vsyncadd (%p1034_p13), %s711_s20, 4294966272  ;;  %p22_p11 = scmp.ge.s32.totalorder %s1347_s27, 4   ;;  %s1621_s15 = smov %s1249_s16 }
 0x17c   : > { %s1622_s16 = smov %s1253_s17  ;;  %s1623_s17 = smov %s1367_s9 }
 0x17d   : > { %s1624_s18 = smov %s1347_s27  ;;  %24 = sbr.rel (!%p22_p11) target bundleno = 8 (0x8), region = 98 }
 0x182   :  { %716 = vsyncpa [#allocation3], 1 }
 0x183   :  { %718 = vsyncpa [#allocation3 + $0x1], 1 }
 0x184   :  { %719 = vsyncpa [#allocation6], 1 }
 0x185   :  { %720 = vsyncpa [#allocation4], 1 }
 0x186   :  { %722 = vsyncpa [#allocation4 + $0x1], 1 }
 0x187   :  { %723 = vsyncpa [#allocation9], 1 }
 0x188   :  { %725 = vsyncpa [#allocation9 + $0x1], 1 }

</bundles_post_ra>
